<compile_context>
chip_gen: v7x
topology: tpu7x:2x2x1
jax: 0.10.0
libtpu: 0.0.40
codegen_flags: <defaults>
</compile_context>

<pallas_src>
import jax
import jax.numpy as jnp
from jax.experimental import pallas as pl
from jax.experimental.pallas import tpu as pltpu

input_size = 7
hidden_size = 10
output_size = 4

# Below this batch, skip the grid entirely and keep everything resident in VMEM.
SMALL_BATCH_MAX = 512


def simple_net_kernel(x_ref, w1_ref, b1_ref, w2_ref, b2_ref, o_ref):
    # hidden1: x @ W1 + b1, tanh         (W1: [in, hidden], b1: [1, hidden])
    h = jnp.dot(x_ref[...], w1_ref[...], preferred_element_type=jnp.float32)
    h = jnp.tanh(h + b1_ref[...])
    # hidden2: h @ W2 + b2, sigmoid      (W2: [hidden, out],  b2: [1, out])
    o = jnp.dot(h, w2_ref[...], preferred_element_type=jnp.float32)
    o = o + b2_ref[...]
    o_ref[...] = jax.nn.sigmoid(o).astype(o_ref.dtype)


def simple_net_forward(x, w1, b1, w2, b2, *, batch_tile=4096):
    batch = x.shape[0]

    if batch <= SMALL_BATCH_MAX:
        # Tiny-batch path: single invocation, all operands resident in VMEM,
        # 4-column output stored directly (single masked vst — negligible).
        vmem = pl.BlockSpec(memory_space=pltpu.MemorySpace.VMEM)
        return pl.pallas_call(
            simple_net_kernel,
            out_shape=jax.ShapeDtypeStruct((batch, output_size), jnp.float32),
            in_specs=[vmem, vmem, vmem, vmem, vmem],
            out_specs=vmem,
        )(x, w1, b1, w2, b2)

    # Large-batch path: stream x / output through HBM in large batch tiles while the
    # (tiny) weights and biases stay resident across all grid steps.
    # Keep grid length >= 2 so v7x's two TensorCores both get work; keep the tile a
    # multiple of 8 (sublane alignment of the second-to-last block dim).
    tile = min(batch_tile, batch // 2)
    tile = max(8, (tile // 8) * 8)
    num_tiles = pl.cdiv(batch, tile)
    padded_batch = num_tiles * tile

    x_in = x if padded_batch == batch else jnp.pad(
        x, ((0, padded_batch - batch), (0, 0)))

    # (tile, 7) and (tile, 4) blocks each lane-pad to 128 in VMEM; at tile >= 8192
    # double-buffered input+output would brush v5e's 16 MiB default scoped limit.
    vmem_limit = (64 << 20) if tile >= 8192 else None

    out = pl.pallas_call(
        simple_net_kernel,
        out_shape=jax.ShapeDtypeStruct((padded_batch, output_size), jnp.float32),
        grid=(num_tiles,),
        in_specs=[
            pl.BlockSpec((tile, input_size), lambda i: (i, 0)),
            pl.BlockSpec(w1.shape, lambda i: (0, 0)),   # resident across grid steps
            pl.BlockSpec(b1.shape, lambda i: (0, 0)),
            pl.BlockSpec(w2.shape, lambda i: (0, 0)),
            pl.BlockSpec(b2.shape, lambda i: (0, 0)),
        ],
        out_specs=pl.BlockSpec((tile, output_size), lambda i: (i, 0)),
        compiler_params=pltpu.CompilerParams(
            dimension_semantics=("parallel",),  # v7x: shard batch over both TCs
            vmem_limit_bytes=vmem_limit),
    )(x_in, w1, b1, w2, b2)

    return out if padded_batch == batch else out[:batch]


def init_params(key):
    # Deterministic init mimicking nn.Linear's uniform(-1/sqrt(fan_in), 1/sqrt(fan_in)).
    k1, k2, k3, k4 = jax.random.split(key, 4)
    lim1 = 1.0 / jnp.sqrt(jnp.float32(input_size))
    lim2 = 1.0 / jnp.sqrt(jnp.float32(hidden_size))
    # Stored as [in, out] (transpose of PyTorch's [out, in]).
    w1 = jax.random.uniform(k1, (input_size, hidden_size), jnp.float32, -lim1, lim1)
    b1 = jax.random.uniform(k2, (1, hidden_size), jnp.float32, -lim1, lim1)
    w2 = jax.random.uniform(k3, (hidden_size, output_size), jnp.float32, -lim2, lim2)
    b2 = jax.random.uniform(k4, (1, output_size), jnp.float32, -lim2, lim2)
    return w1, b1, w2, b2


def _reference(x, w1, b1, w2, b2):
    return jax.nn.sigmoid(jnp.tanh(x @ w1 + b1) @ w2 + b2)


if __name__ == "__main__":
    key = jax.random.PRNGKey(0)
    k_small, k_large, k_ragged, k_p = jax.random.split(key, 4)
    w1, b1, w2, b2 = init_params(k_p)

    # 1) Tiny-batch path (no grid, VMEM-resident, 4-column output).
    batch_small = 8
    x_small = jax.random.normal(k_small, (batch_small, input_size), jnp.float32)
    out_small = jax.block_until_ready(simple_net_forward(x_small, w1, b1, w2, b2))
    ref_small = _reference(x_small, w1, b1, w2, b2)
    assert out_small.shape == (batch_small, output_size)
    assert jnp.allclose(out_small, ref_small, atol=1e-5, rtol=1e-5)

    # 2) Gridded path, divisible batch (tile capped to batch//2 -> grid of 2).
    batch_large = 2048
    x_large = jax.random.normal(k_large, (batch_large, input_size), jnp.float32)
    out_large = jax.block_until_ready(simple_net_forward(x_large, w1, b1, w2, b2))
    ref_large = _reference(x_large, w1, b1, w2, b2)
    assert out_large.shape == (batch_large, output_size)
    assert jnp.allclose(out_large, ref_large, atol=1e-5, rtol=1e-5)

    # 3) Gridded path, non-divisible batch (exercises cdiv + wrapper pad + row slice).
    batch_ragged = 777
    x_ragged = jax.random.normal(k_ragged, (batch_ragged, input_size), jnp.float32)
    out_ragged = jax.block_until_ready(simple_net_forward(x_ragged, w1, b1, w2, b2))
    ref_ragged = _reference(x_ragged, w1, b1, w2, b2)
    assert out_ragged.shape == (batch_ragged, output_size)
    assert jnp.allclose(out_ragged, ref_ragged, atol=1e-5, rtol=1e-5)

    print("KERNEL_OK")
</pallas_src>

<mosaic_0001>
module attributes {stable_mosaic.version = 11 : i64} {
  func.func @simple_net_kernel(%arg0: memref<8x7xf32, #tpu.memory_space<vmem>>, %arg1: memref<7x10xf32, #tpu.memory_space<vmem>>, %arg2: memref<1x10xf32, #tpu.memory_space<vmem>>, %arg3: memref<10x4xf32, #tpu.memory_space<vmem>>, %arg4: memref<1x4xf32, #tpu.memory_space<vmem>>, %arg5: memref<8x4xf32, #tpu.memory_space<vmem>>) attributes {dimension_semantics = [], scalar_prefetch = 0 : i64, scratch_operands = 0 : i64, tpu.core_type = #tpu.core_type<tc>} {
    %c0 = arith.constant 0 : index
    %c0_0 = arith.constant 0 : index
    %0 = vector.load %arg0[%c0, %c0_0] : memref<8x7xf32, #tpu.memory_space<vmem>>, vector<8x7xf32>
    %c0_1 = arith.constant 0 : index
    %c0_2 = arith.constant 0 : index
    %1 = vector.load %arg1[%c0_1, %c0_2] : memref<7x10xf32, #tpu.memory_space<vmem>>, vector<7x10xf32>
    %cst = arith.constant dense<0.000000e+00> : vector<8x10xf32>
    %2 = tpu.matmul %0, %1, %cst {dimension_numbers = #tpu.dot_dimension_numbers<[1], [0], [0], [1], [0, 0, 1, 1], [], []>} : vector<8x7xf32>, vector<7x10xf32>, vector<8x10xf32> -> vector<8x10xf32>
    %c0_3 = arith.constant 0 : index
    %c0_4 = arith.constant 0 : index
    %3 = vector.load %arg2[%c0_3, %c0_4] : memref<1x10xf32, #tpu.memory_space<vmem>>, vector<1x10xf32>
    %4 = vector.broadcast %3 : vector<1x10xf32> to vector<8x10xf32>
    %5 = arith.addf %2, %4 : vector<8x10xf32>
    %6 = math.tanh %5 : vector<8x10xf32>
    %c0_5 = arith.constant 0 : index
    %c0_6 = arith.constant 0 : index
    %7 = vector.load %arg3[%c0_5, %c0_6] : memref<10x4xf32, #tpu.memory_space<vmem>>, vector<10x4xf32>
    %cst_7 = arith.constant dense<0.000000e+00> : vector<8x4xf32>
    %8 = tpu.matmul %6, %7, %cst_7 {dimension_numbers = #tpu.dot_dimension_numbers<[1], [0], [0], [1], [0, 0, 1, 1], [], []>} : vector<8x10xf32>, vector<10x4xf32>, vector<8x4xf32> -> vector<8x4xf32>
    %c0_8 = arith.constant 0 : index
    %c0_9 = arith.constant 0 : index
    %9 = vector.load %arg4[%c0_8, %c0_9] : memref<1x4xf32, #tpu.memory_space<vmem>>, vector<1x4xf32>
    %10 = vector.broadcast %9 : vector<1x4xf32> to vector<8x4xf32>
    %11 = arith.addf %8, %10 : vector<8x4xf32>
    %12 = arith.negf %11 : vector<8x4xf32>
    %13 = math.exp %12 : vector<8x4xf32>
    %cst_10 = arith.constant 1.000000e+00 : f32
    %14 = vector.broadcast %cst_10 : f32 to vector<8x4xf32>
    %15 = arith.addf %14, %13 : vector<8x4xf32>
    %16 = arith.divf %14, %15 : vector<8x4xf32>
    %c0_11 = arith.constant 0 : index
    %c0_12 = arith.constant 0 : index
    %17 = vector.load %arg5[%c0_11, %c0_12] : memref<8x4xf32, #tpu.memory_space<vmem>>, vector<8x4xf32>
    tpu.vector_store %arg5[%c0_11, %c0_12], %16 {strides = array<i32>} : memref<8x4xf32, #tpu.memory_space<vmem>>, vector<8x4xf32>,
    return
  }
}

</mosaic_0001>

<bundles_post_ra>
// kernel: tpu_custom_call.1
= control target key start
LH: loop header
LB: loop body
LE: loop exit
PB: predicated region body
PF: predicated region fallthrough
CT: control target
= control target key end

     0   :  { %vm33_vm0 = vcmask 1046528   ;;  %vm29_vm1 = vcmask 56320   ;;  %v245_v0 = vmov 0.0   ;;  %vm246_vm2 = vmmov 0   ;;  %s300_s1 = inlined_call_operand.vmem [shape: f32[7,10], index: 1, kind: input, shape index: {}]   ;;  %s301_s0 = inlined_call_operand.vmem [shape: f32[8,7], index: 0, kind: input, shape index: {}]   ;;  %s302_s3 = inlined_call_operand.vmem [shape: f32[10,4], index: 3, kind: input, shape index: {}]   ;;  %s303_s2 = inlined_call_operand.vmem [shape: f32[1,10], index: 2, kind: input, shape index: {}]   ;;  %s304_s4 = inlined_call_operand.vmem [shape: f32[1,4], index: 4, kind: input, shape index: {}]   ;;  %s305_s5 = inlined_call_operand.vmem [shape: f32[8,4], index: 5, kind: output, shape index: {}]  }
   0x1   :  { %219 = vmatprep.subr.mxu0 %v245_v0  ;;  %v21_v1 = vld [vmem:[%s300_s1] sm:$0x7f]  ;;  %221 = vmatprep.mubr.msk.f32.mxu0 %vm246_vm2, %v245_v0  ;;  %vm121_vm3 = vcmask 1041408   ;;  %v247_v3 = vmov 0.0|0.0   ;;  %v109_v5 = vld [vmem:[%s302_s3 + $0x8] sm:$0x3] }
   0x2   :  { %v20_v2 = vld [vmem:[%s301_s0] sm:$0xff]  ;;  %220 = vmatpush3.msk.msra.mxu0 %vm33_vm0, %v21_v1  ;;  %228 = vmatprep.mubr.msk.f32.mxu1 %vm246_vm2, %v245_v0  ;;  %vm248_vm4 = vmmov 1   ;;  %vm117_vm6 = vcmask 80896   ;;  %vm201_vm7 = vcmask 31744  }
   0x3   :  { %222 = vmatmul.mubr.msk.f32.vlgmr.msra.gmra.mrb[0].mxu0 %vm29_vm1, %v20_v2  ;;  %231 = vmatprep.subr.bf16.mxu1 %v247_v3  ;;  %v108_v4 = vld [vmem:[%s302_s3] sm:$0xff]  ;;  %vm233_vm5 = vmpackc.low %vm121_vm3, %vm248_vm4 }
   0x4   :  { %v232_v6 = vpack.c.bf16 %v109_v5, %v108_v4  ;;  %v207_v7 = vld [vmem:[%s303_s2] ss:$0 sm:$0xff] }
   0x5   :  { %v210_v12 = vld [vmem:[%s304_s4] ss:$0 sm:$0xff] }
   0x6   :  { %234 = vmatpush3.bf16.msk.msra.mxu1 %vm233_vm5, %v232_v6 }
  0xd6   :  { %v103_v8 = vpop.f32.mrb[0].mxu0 }
  0xd7   :  { %v104_v9 = vadd.f32 %v207_v7, %v103_v8  ;;  %v223_v10 = vpop.f32.mrb[1].mxu0 }
  0xd9   :  { %239 = vtanh.f32 %v104_v9 }
  0xe3   :  { %v240_v11 = vpop.eup %239 }
  0xe4   :  { %229 = vmatmul.mubr.msk.f32.vlgmr.msra.gmra.mrb[0].mxu1 %vm117_vm6, %v240_v11 }
 0x1b7   :  { %v191_v13 = vpop.f32.mrb[0].mxu1 }
 0x1b8   :  { %v192_v14 = vadd.f32 %v210_v12, %v191_v13  ;;  %v230_v15 = vpop.f32.mrb[1].mxu1 }
 0x1ba   :  { %v213_v16 = vmul.f32 -1.442695, %v192_v14 }
 0x1bc   :  { %241 = vpow2.f32 %v213_v16 }
 0x1c6   :  { %v242_v17 = vpop.eup %241 }
 0x1c7   :  { %v198_v18 = vadd.f32 1.0, %v242_v17 }
 0x1c9   :  { %243 = vrcp.f32 %v198_v18 }
 0x1d3   :  { %v244_v19 = vpop.eup %243 }
 0x1d4   :  { %202 = vst.msk [vmem:[%s305_s5] sm:$0xff] %vm201_vm7, %v244_v19 }

</bundles_post_ra>
